<compile_context>
chip_gen: v6e
topology: v6e:2x2x1
jax: 0.10.0
libtpu: 0.0.40
codegen_flags: <defaults>
</compile_context>

<pallas_src>
import functools

import jax
import jax.numpy as jnp
from jax.experimental import pallas as pl
from jax.experimental.pallas import tpu as pltpu


STATE_DIM = 32
HIDDEN_DIM = 256
IN_DIM = STATE_DIM + HIDDEN_DIM        # 288
FC1_DIM = 32
ACTION_DIM = 3
LEAKY_SLOPE = 0.01                     # torch.nn.functional.leaky_relu default

FC1_PAD = 128                          # pad fc1 width 32  -> 128 (lane-dense)
OUT_PAD = 128                          # pad action dim 3  -> 128 (lane-dense stores)
MAX_BLOCK_B = 512                      # batch tile (multiple of 8, VMEM-safe on v7x)


def actor_kernel(x_ref, w1_ref, b1_ref, w2_ref, b2_ref, o_ref):
    # fc1 on the MXU: (TB, 288) @ (288, 128), bf16 operands, f32 accumulation.
    h = jnp.dot(x_ref[...], w1_ref[...], preferred_element_type=jnp.float32)
    h = h + b1_ref[...]
    # leaky_relu(slope=0.01): max(x, 0.01*x) is exact and select-free.
    h = jnp.maximum(h, LEAKY_SLOPE * h)
    # fc2 on the MXU: (TB, 128) @ (128, 128), f32.
    y = jnp.dot(h, w2_ref[...], preferred_element_type=jnp.float32)
    y = y + b2_ref[...]
    o_ref[...] = jnp.tanh(y).astype(o_ref.dtype)


def _round_up(x, m):
    return (x + m - 1) // m * m


@functools.partial(jax.jit, static_argnames=("use_bf16",))
def actor_forward(state, w1, b1, w2, b2, *, use_bf16=True):
    """state: (B, 288) f32; w1: (288, 32); b1: (1, 32); w2: (32, 3); b2: (1, 3)."""
    B = state.shape[0]
    assert state.shape[1] == IN_DIM

    # Zero-pad the tiny feature dims up to lane-dense (128-wide) slabs.
    # Padded fc1 columns get 0*x + 0 bias -> 0 -> leaky_relu(0)=0 -> contribute
    # nothing through the zero-padded rows of W2; padded output columns are
    # tanh(0)=0 and sliced off below, so the math is unchanged.
    w1p = jnp.zeros((IN_DIM, FC1_PAD), jnp.float32).at[:, :FC1_DIM].set(w1)
    b1p = jnp.zeros((1, FC1_PAD), jnp.float32).at[:, :FC1_DIM].set(b1)
    w2p = jnp.zeros((FC1_PAD, OUT_PAD), jnp.float32).at[:FC1_DIM, :ACTION_DIM].set(w2)
    b2p = jnp.zeros((1, OUT_PAD), jnp.float32).at[:, :ACTION_DIM].set(b2)

    x = state
    if use_bf16:
        # bf16 state/W1 halves HBM traffic and feeds the MXU at full rate;
        # accumulation stays f32 via preferred_element_type.
        x = x.astype(jnp.bfloat16)
        w1p = w1p.astype(jnp.bfloat16)

    # Batch tiling: sublane-aligned tile, pad B up to a tile multiple.
    tb = min(MAX_BLOCK_B, _round_up(B, 8))
    b_pad = _round_up(B, tb)
    if b_pad != B:
        x = jnp.pad(x, ((0, b_pad - B), (0, 0)))

    out = pl.pallas_call(
        actor_kernel,
        out_shape=jax.ShapeDtypeStruct((b_pad, OUT_PAD), jnp.float32),
        grid=(b_pad // tb,),
        in_specs=[
            pl.BlockSpec((tb, IN_DIM), lambda i: (i, 0)),        # state tile, pipelined
            pl.BlockSpec((IN_DIM, FC1_PAD), lambda i: (0, 0)),   # VMEM-resident weights
            pl.BlockSpec((1, FC1_PAD), lambda i: (0, 0)),
            pl.BlockSpec((FC1_PAD, OUT_PAD), lambda i: (0, 0)),
            pl.BlockSpec((1, OUT_PAD), lambda i: (0, 0)),
        ],
        out_specs=pl.BlockSpec((tb, OUT_PAD), lambda i: (i, 0)),
        compiler_params=pltpu.CompilerParams(
            dimension_semantics=("parallel",),                   # megacore on v7x
        ),
    )(x, w1p, b1p, w2p, b2p)

    # Strip batch padding and the lane padding of the 3-wide action head.
    return out[:B, :ACTION_DIM]


def init_params(key):
    """Deterministic init mimicking torch.nn.Linear (uniform +/- 1/sqrt(fan_in))."""
    k1, k2, k3, k4 = jax.random.split(key, 4)
    bound1 = 1.0 / jnp.sqrt(IN_DIM)
    bound2 = 1.0 / jnp.sqrt(FC1_DIM)
    # weights stored transposed (fan_in, fan_out) so the kernel does x @ W
    w1 = jax.random.uniform(k1, (IN_DIM, FC1_DIM), jnp.float32, -bound1, bound1)
    b1 = jax.random.uniform(k2, (1, FC1_DIM), jnp.float32, -bound1, bound1)
    w2 = jax.random.uniform(k3, (FC1_DIM, ACTION_DIM), jnp.float32, -bound2, bound2)
    b2 = jax.random.uniform(k4, (1, ACTION_DIM), jnp.float32, -bound2, bound2)
    return w1, b1, w2, b2


def reference_forward(state, w1, b1, w2, b2):
    h = state @ w1 + b1
    h = jnp.where(h > 0, h, LEAKY_SLOPE * h)
    return jnp.tanh(h @ w2 + b2)


if __name__ == "__main__":
    key = jax.random.PRNGKey(0)
    k_params, k_state = jax.random.split(key)
    w1, b1, w2, b2 = init_params(k_params)

    # --- strict f32 check (no bf16 casting) ---
    B = 8
    state = jax.random.normal(k_state, (B, IN_DIM), jnp.float32)
    out = jax.block_until_ready(actor_forward(state, w1, b1, w2, b2, use_bf16=False))
    ref = reference_forward(state, w1, b1, w2, b2)
    assert out.shape == (B, ACTION_DIM)
    assert jnp.allclose(out, ref, atol=1e-5, rtol=1e-5), "f32 mismatch"

    # --- bf16 streaming path + non-multiple-of-tile batch (padding path) ---
    B2 = 13
    state2 = jax.random.normal(jax.random.PRNGKey(1), (B2, IN_DIM), jnp.float32)
    out2 = jax.block_until_ready(actor_forward(state2, w1, b1, w2, b2, use_bf16=True))
    ref2 = reference_forward(state2, w1, b1, w2, b2)
    assert out2.shape == (B2, ACTION_DIM)
    assert jnp.allclose(out2, ref2, atol=3e-2), "bf16 mismatch"

    print("KERNEL_OK")
</pallas_src>

<mosaic_0001>
module attributes {stable_mosaic.version = 11 : i64} {
  func.func @actor_kernel(%arg0: i32, %arg1: memref<8x288xf32, #tpu.memory_space<vmem>>, %arg2: memref<288x128xf32, #tpu.memory_space<vmem>>, %arg3: memref<1x128xf32, #tpu.memory_space<vmem>>, %arg4: memref<128x128xf32, #tpu.memory_space<vmem>>, %arg5: memref<1x128xf32, #tpu.memory_space<vmem>>, %arg6: memref<8x128xf32, #tpu.memory_space<vmem>>) attributes {dimension_semantics = [#tpu.dimension_semantics<parallel>], iteration_bounds = array<i64: 1>, scalar_prefetch = 0 : i64, scratch_operands = 0 : i64, tpu.core_type = #tpu.core_type<tc>, window_params = [{transform_indices = @transform_0, window_bounds = array<i64: 8, 288>}, {pipeline_mode = #tpu.pipeline_mode<synchronous>, transform_indices = @transform_1, window_bounds = array<i64: 288, 128>}, {pipeline_mode = #tpu.pipeline_mode<synchronous>, transform_indices = @transform_2, window_bounds = array<i64: 1, 128>}, {pipeline_mode = #tpu.pipeline_mode<synchronous>, transform_indices = @transform_3, window_bounds = array<i64: 128, 128>}, {pipeline_mode = #tpu.pipeline_mode<synchronous>, transform_indices = @transform_4, window_bounds = array<i64: 1, 128>}, {transform_indices = @transform_5, window_bounds = array<i64: 8, 128>}]} {
    %c0 = arith.constant 0 : index
    %c0_0 = arith.constant 0 : index
    %0 = vector.load %arg1[%c0, %c0_0] : memref<8x288xf32, #tpu.memory_space<vmem>>, vector<8x288xf32>
    %c0_1 = arith.constant 0 : index
    %c0_2 = arith.constant 0 : index
    %1 = vector.load %arg2[%c0_1, %c0_2] : memref<288x128xf32, #tpu.memory_space<vmem>>, vector<288x128xf32>
    %cst = arith.constant dense<0.000000e+00> : vector<8x128xf32>
    %2 = tpu.matmul %0, %1, %cst {dimension_numbers = #tpu.dot_dimension_numbers<[1], [0], [0], [1], [0, 0, 1, 1], [], []>} : vector<8x288xf32>, vector<288x128xf32>, vector<8x128xf32> -> vector<8x128xf32>
    %c0_3 = arith.constant 0 : index
    %c0_4 = arith.constant 0 : index
    %3 = vector.load %arg3[%c0_3, %c0_4] : memref<1x128xf32, #tpu.memory_space<vmem>>, vector<1x128xf32>
    %4 = vector.broadcast %3 : vector<1x128xf32> to vector<8x128xf32>
    %5 = arith.addf %2, %4 : vector<8x128xf32>
    %cst_5 = arith.constant 0.00999999977 : f32
    %6 = vector.broadcast %cst_5 : f32 to vector<8x128xf32>
    %7 = arith.mulf %6, %5 : vector<8x128xf32>
    %8 = arith.maximumf %5, %7 : vector<8x128xf32>
    %c0_6 = arith.constant 0 : index
    %c0_7 = arith.constant 0 : index
    %9 = vector.load %arg4[%c0_6, %c0_7] : memref<128x128xf32, #tpu.memory_space<vmem>>, vector<128x128xf32>
    %cst_8 = arith.constant dense<0.000000e+00> : vector<8x128xf32>
    %10 = tpu.matmul %8, %9, %cst_8 {dimension_numbers = #tpu.dot_dimension_numbers<[1], [0], [0], [1], [0, 0, 1, 1], [], []>} : vector<8x128xf32>, vector<128x128xf32>, vector<8x128xf32> -> vector<8x128xf32>
    %c0_9 = arith.constant 0 : index
    %c0_10 = arith.constant 0 : index
    %11 = vector.load %arg5[%c0_9, %c0_10] : memref<1x128xf32, #tpu.memory_space<vmem>>, vector<1x128xf32>
    %12 = vector.broadcast %11 : vector<1x128xf32> to vector<8x128xf32>
    %13 = arith.addf %10, %12 : vector<8x128xf32>
    %14 = math.tanh %13 : vector<8x128xf32>
    %c0_11 = arith.constant 0 : index
    %c0_12 = arith.constant 0 : index
    %15 = vector.load %arg6[%c0_11, %c0_12] : memref<8x128xf32, #tpu.memory_space<vmem>>, vector<8x128xf32>
    tpu.vector_store %arg6[%c0_11, %c0_12], %14 {strides = array<i32>} : memref<8x128xf32, #tpu.memory_space<vmem>>, vector<8x128xf32>,
    return
  }
  func.func @transform_0(%arg0: i32) -> (i32, i32) {
    %c0_i32 = arith.constant 0 : i32
    %c0_i32_0 = arith.constant 0 : i32
    return %arg0, %c0_i32 : i32, i32
  }
  func.func @transform_1(%arg0: i32) -> (i32, i32) {
    %c0_i32 = arith.constant 0 : i32
    %c0_i32_0 = arith.constant 0 : i32
    %c0_i32_1 = arith.constant 0 : i32
    return %c0_i32, %c0_i32_0 : i32, i32
  }
  func.func @transform_2(%arg0: i32) -> (i32, i32) {
    %c0_i32 = arith.constant 0 : i32
    %c0_i32_0 = arith.constant 0 : i32
    %c0_i32_1 = arith.constant 0 : i32
    return %c0_i32, %c0_i32_0 : i32, i32
  }
  func.func @transform_3(%arg0: i32) -> (i32, i32) {
    %c0_i32 = arith.constant 0 : i32
    %c0_i32_0 = arith.constant 0 : i32
    %c0_i32_1 = arith.constant 0 : i32
    return %c0_i32, %c0_i32_0 : i32, i32
  }
  func.func @transform_4(%arg0: i32) -> (i32, i32) {
    %c0_i32 = arith.constant 0 : i32
    %c0_i32_0 = arith.constant 0 : i32
    %c0_i32_1 = arith.constant 0 : i32
    return %c0_i32, %c0_i32_0 : i32, i32
  }
  func.func @transform_5(%arg0: i32) -> (i32, i32) {
    %c0_i32 = arith.constant 0 : i32
    %c0_i32_0 = arith.constant 0 : i32
    return %arg0, %c0_i32 : i32, i32
  }
}

</mosaic_0001>

<bundles_post_ra>
// kernel: actor_forward.1
= control target key start
LH: loop header
LB: loop body
LE: loop exit
PB: predicated region body
PF: predicated region fallthrough
CT: control target
= control target key end

     0   :  { %v421_v3 = vmov 0.0   ;;  %vm422_vm0 = vmmov 0   ;;  %vm66_vm1 = vcmask 261120   ;;  %s651_s1 = inlined_call_operand.vmem [shape: f32[288,128], index: 1, kind: input, shape index: {}]   ;;  %s652_s0 = inlined_call_operand.vmem [shape: f32[8,288], index: 0, kind: input, shape index: {}]   ;;  %s653_s3 = inlined_call_operand.vmem [shape: f32[128,128], index: 3, kind: input, shape index: {}]   ;;  %s654_s2 = inlined_call_operand.vmem [shape: f32[1,128], index: 2, kind: input, shape index: {}]   ;;  %s655_s4 = inlined_call_operand.vmem [shape: f32[1,128], index: 4, kind: input, shape index: {}]   ;;  %s656_s5 = inlined_call_operand.vmem [shape: f32[8,128], index: 5, kind: output, shape index: {}]  }
   0x1   :  { %v54_v0 = vld [vmem:[%s651_s1 + $0xf8] sm:$0xff]  ;;  %v53_v2 = vld [vmem:[%s651_s1 + $0xf0] sm:$0xff]  ;;  %371 = vmatprep.subr.mxu1 %v421_v3  ;;  %379 = vmatprep.mubr.msk.f32.mxu1 %vm422_vm0, %v421_v3  ;;  %v52_v5 = vld [vmem:[%s651_s1 + $0xe8] sm:$0xff] }
   0x2   :  { %v38_v1 = vld [vmem:[%s651_s1 + $0x78] sm:$0xff]  ;;  %314 = vmatprep.subr.mxu0 %v54_v0  ;;  %v37_v4 = vld [vmem:[%s651_s1 + $0x70] sm:$0xff]  ;;  %v36_v6 = vld [vmem:[%s651_s1 + $0x68] sm:$0xff] }
   0x3   :  { %315 = vmatpush3.msra.mxu0 %v38_v1  ;;  %v51_v7 = vld [vmem:[%s651_s1 + $0xe0] sm:$0xff]  ;;  %v50_v9 = vld [vmem:[%s651_s1 + $0xd8] sm:$0xff]  ;;  %v49_v11 = vld [vmem:[%s651_s1 + $0xd0] sm:$0xff] }
   0x4   :  { %316 = vmatprep.subr.mxu0 %v53_v2  ;;  %v35_v8 = vld [vmem:[%s651_s1 + $0x60] sm:$0xff]  ;;  %v34_v10 = vld [vmem:[%s651_s1 + $0x58] sm:$0xff]  ;;  %v33_v12 = vld [vmem:[%s651_s1 + $0x50] sm:$0xff] }
   0x5   :  { %317 = vmatpush3.msra.mxu0 %v37_v4  ;;  %v48_v13 = vld [vmem:[%s651_s1 + $0xc8] sm:$0xff]  ;;  %v58_v14 = vld [vmem:[%s651_s1 + $0x118] sm:$0xff]  ;;  %v57_v17 = vld [vmem:[%s651_s1 + $0x110] sm:$0xff] }
   0x6   :  { %318 = vmatprep.subr.mxu0 %v52_v5  ;;  %v32_v15 = vld [vmem:[%s651_s1 + $0x48] sm:$0xff]  ;;  %372 = vmatpush3.msra.mxu1 %v58_v14  ;;  %v47_v18 = vld [vmem:[%s651_s1 + $0xc0] sm:$0xff]  ;;  %v46_v21 = vld [vmem:[%s651_s1 + $0xb8] sm:$0xff] }
   0x7   :  { %319 = vmatpush3.msra.mxu0 %v36_v6  ;;  %v21_v16 = vld [vmem:[%s652_s0 + $0x8] sm:$0xff]  ;;  %373 = vmatprep.subr.mxu1 %v421_v3  ;;  %v31_v19 = vld [vmem:[%s651_s1 + $0x40] sm:$0xff]  ;;  %v30_v22 = vld [vmem:[%s651_s1 + $0x38] sm:$0xff] }
   0x8   :  { %320 = vmatprep.subr.mxu0 %v51_v7  ;;  %134 = vmatprep.mubr.f32.mxu0 %v21_v16  ;;  %v56_v20 = vld [vmem:[%s651_s1 + $0x108] sm:$0xff]  ;;  %v55_v23 = vld [vmem:[%s651_s1 + $0x100] sm:$0xff]  ;;  %v45_v24 = vld [vmem:[%s651_s1 + $0xb0] sm:$0xff] }
   0x9   :  { %321 = vmatpush3.msra.mxu0 %v35_v8  ;;  %374 = vmatpush3.msra.mxu1 %v57_v17  ;;  %v22_v25 = vld [vmem:[%s652_s0 + $0x10] sm:$0xff]  ;;  %v44_v27 = vld [vmem:[%s651_s1 + $0xa8] sm:$0xff]  ;;  %v227_v28 = vld [vmem:[%s653_s3 + $0x78] sm:$0xff] }
   0xa   :  { %322 = vmatprep.subr.mxu0 %v50_v9  ;;  %375 = vmatprep.subr.mxu1 %v421_v3  ;;  %v29_v26 = vld [vmem:[%s651_s1 + $0x30] sm:$0xff]  ;;  %v28_v29 = vld [vmem:[%s651_s1 + $0x28] sm:$0xff]  ;;  %v43_v30 = vld [vmem:[%s651_s1 + $0xa0] sm:$0xff] }
   0xb   :  { %323 = vmatpush3.msra.mxu0 %v34_v10  ;;  %376 = vmatpush3.msra.mxu1 %v56_v20  ;;  %v226_v31 = vld [vmem:[%s653_s3 + $0x70] sm:$0xff]  ;;  %v27_v32 = vld [vmem:[%s651_s1 + $0x20] sm:$0xff]  ;;  %v42_v33 = vld [vmem:[%s651_s1 + $0x98] sm:$0xff] }
   0xc   :  { %324 = vmatprep.subr.mxu0 %v49_v11  ;;  %377 = vmatprep.subr.mxu1 %v421_v3  ;;  %v225_v34 = vld [vmem:[%s653_s3 + $0x68] sm:$0xff]  ;;  %v26_v35 = vld [vmem:[%s651_s1 + $0x18] sm:$0xff]  ;;  %v41_v36 = vld [vmem:[%s651_s1 + $0x90] sm:$0xff] }
   0xd   :  { %325 = vmatpush3.msra.mxu0 %v33_v12  ;;  %378 = vmatpush3.msra.mxu1 %v55_v23  ;;  %v224_v37 = vld [vmem:[%s653_s3 + $0x60] sm:$0xff]  ;;  %v25_v38 = vld [vmem:[%s651_s1 + $0x10] sm:$0xff]  ;;  %v40_v39 = vld [vmem:[%s651_s1 + $0x88] sm:$0xff] }
   0xe   :  { %326 = vmatprep.subr.mxu0 %v48_v13  ;;  %380 = vmatmul.mubr.msk.f32.vlgmr.msra.gmra.mxu1 %vm66_vm1, %v22_v25  ;;  %v223_v40 = vld [vmem:[%s653_s3 + $0x58] sm:$0xff]  ;;  %v24_v41 = vld [vmem:[%s651_s1 + $0x8] sm:$0xff]  ;;  %v39_v42 = vld [vmem:[%s651_s1 + $0x80] sm:$0xff] }
   0xf   :  { %327 = vmatpush3.msra.mxu0 %v32_v15  ;;  %382 = vmatprep.subr.mxu1 %v421_v3  ;;  %v222_v43 = vld [vmem:[%s653_s3 + $0x50] sm:$0xff]  ;;  %v23_v44 = vld [vmem:[%s651_s1] sm:$0xff]  ;;  %v221_v46 = vld [vmem:[%s653_s3 + $0x48] sm:$0xff] }
  0x10   :  { %328 = vmatprep.subr.mxu0 %v47_v18  ;;  %383 = vmatpush3.msra.mxu1 %v227_v28  ;;  %v20_v45 = vld [vmem:[%s652_s0] sm:$0xff]  ;;  %v219_v48 = vld [vmem:[%s653_s3 + $0x38] sm:$0xff]  ;;  %v218_v49 = vld [vmem:[%s653_s3 + $0x30] sm:$0xff] }
  0x11   :  { %329 = vmatpush3.msra.mxu0 %v31_v19  ;;  %384 = vmatprep.subr.mxu1 %v421_v3  ;;  %v220_v47 = vld [vmem:[%s653_s3 + $0x40] sm:$0xff]  ;;  %v217_v50 = vld [vmem:[%s653_s3 + $0x28] sm:$0xff]  ;;  %v215_v52 = vld [vmem:[%s653_s3 + $0x18] sm:$0xff] }
  0x12   :  { %330 = vmatprep.subr.mxu0 %v46_v21  ;;  %385 = vmatpush3.msra.mxu1 %v226_v31  ;;  %v216_v51 = vld [vmem:[%s653_s3 + $0x20] sm:$0xff]  ;;  %v214_v53 = vld [vmem:[%s653_s3 + $0x10] sm:$0xff]  ;;  %v213_v54 = vld [vmem:[%s653_s3 + $0x8] sm:$0xff] }
  0x13   :  { %331 = vmatpush3.msra.mxu0 %v30_v22  ;;  %386 = vmatprep.subr.mxu1 %v421_v3  ;;  %v212_v55 = vld [vmem:[%s653_s3] sm:$0xff] }
  0x14   :  { %332 = vmatprep.subr.mxu0 %v45_v24  ;;  %387 = vmatpush3.msra.mxu1 %v225_v34  ;;  %v311_v60 = vld [vmem:[%s654_s2] ss:$0 sm:$0xff] }
  0x15   :  { %333 = vmatpush3.msra.mxu0 %v29_v26  ;;  %388 = vmatprep.subr.mxu1 %v421_v3  ;;  %v313_v2 = vld [vmem:[%s655_s4] ss:$0 sm:$0xff] }
  0x16   :  { %334 = vmatprep.subr.mxu0 %v44_v27  ;;  %389 = vmatpush3.msra.mxu1 %v224_v37 }
  0x17   :  { %335 = vmatpush3.msra.mxu0 %v28_v29  ;;  %390 = vmatprep.subr.mxu1 %v421_v3 }
  0x18   :  { %336 = vmatprep.subr.mxu0 %v43_v30  ;;  %391 = vmatpush3.msra.mxu1 %v223_v40 }
  0x19   :  { %337 = vmatpush3.msra.mxu0 %v27_v32  ;;  %392 = vmatprep.subr.mxu1 %v421_v3 }
  0x1a   :  { %338 = vmatprep.subr.mxu0 %v42_v33  ;;  %393 = vmatpush3.msra.mxu1 %v222_v43 }
  0x1b   :  { %339 = vmatpush3.msra.mxu0 %v26_v35  ;;  %394 = vmatprep.subr.mxu1 %v421_v3 }
  0x1c   :  { %340 = vmatprep.subr.mxu0 %v41_v36  ;;  %395 = vmatpush3.msra.mxu1 %v221_v46 }
  0x1d   :  { %341 = vmatpush3.msra.mxu0 %v25_v38  ;;  %396 = vmatprep.subr.mxu1 %v421_v3 }
  0x1e   :  { %342 = vmatprep.subr.mxu0 %v40_v39  ;;  %414 = vmatprep.mubr.msk.f32.mxu1 %vm422_vm0, %v421_v3 }
  0x1f   :  { %343 = vmatpush3.msra.mxu0 %v24_v41  ;;  %397 = vmatpush3.msra.mxu1 %v220_v47 }
  0x20   :  { %344 = vmatprep.subr.mxu0 %v39_v42  ;;  %398 = vmatprep.subr.mxu1 %v421_v3 }
  0x21   :  { %345 = vmatpush3.msra.mxu0 %v23_v44  ;;  %399 = vmatpush3.msra.mxu1 %v219_v48 }
  0x22   :  { %135 = vmatmul.mubr.f32.vlgmr.msra.gmra.mxu0 %v20_v45  ;;  %400 = vmatprep.subr.mxu1 %v421_v3 }
  0x23   :  { %401 = vmatpush3.msra.mxu1 %v218_v49 }
  0x24   :  { %402 = vmatprep.subr.mxu1 %v421_v3 }
  0x25   :  { %403 = vmatpush3.msra.mxu1 %v217_v50 }
  0x26   :  { %404 = vmatprep.subr.mxu1 %v421_v3 }
  0x27   :  { %405 = vmatpush3.msra.mxu1 %v216_v51 }
  0x28   :  { %406 = vmatprep.subr.mxu1 %v421_v3 }
  0x29   :  { %407 = vmatpush3.msra.mxu1 %v215_v52 }
  0x2a   :  { %408 = vmatprep.subr.mxu1 %v421_v3 }
  0x2b   :  { %409 = vmatpush3.msra.mxu1 %v214_v53 }
  0x2c   :  { %410 = vmatprep.subr.mxu1 %v421_v3 }
  0x2d   :  { %411 = vmatpush3.msra.mxu1 %v213_v54 }
  0x2e   :  { %412 = vmatprep.subr.mxu1 %v421_v3 }
  0x2f   :  { %413 = vmatpush3.msra.mxu1 %v212_v55 }
  0xce   :  { %v206_v56 = vpop.f32.mrf.mxu1 }
  0xd0   :  { %v381_v57 = vpop.f32.mrf.mxu1 }
  0xe2   :  { %v346_v58 = vpop.f32.mrf.mxu0 }
  0xe4   :  { %v347_v59 = vpop.f32.mrf.mxu0 }
  0xe5   :  { %v348_v61 = vadd.f32 %v347_v59, %v346_v58 }
  0xe7   :  { %v137_v62 = vadd.f32 %v348_v61, %v311_v60 }
  0xe9   :  { %v207_v63 = vadd.f32 %v206_v56, %v137_v62 }
  0xeb   :  { %v210_v0 = vmul.f32 0.01, %v207_v63 }
  0xed   :  { %v211_v1 = vmax.f32 %v207_v63, %v210_v0 }
  0xef   :  { %415 = vmatmul.mubr.f32.vlgmr.msra.gmra.mxu1 %v211_v1 }
 0x1af   :  { %v301_v3 = vpop.f32.mrf.mxu1 }
 0x1b0   :  { %v302_v4 = vadd.f32 %v313_v2, %v301_v3 }
 0x1b1   :  { %v416_v5 = vpop.f32.mrf.mxu1 }
 0x1b2   :  { %419 = vtanh.f32 %v302_v4 }
 0x1bf   :  { %v420_v6 = vpop.eup %419 }
 0x1c0   :  { %306 = vst [vmem:[%s656_s5] sm:$0xff] %v420_v6 }

</bundles_post_ra>
